<compile_context>
chip_gen: v7x
topology: tpu7x:2x2x1
jax: 0.10.0
libtpu: 0.0.40
codegen_flags: <defaults>
</compile_context>

<pallas_src>
import jax
import jax.numpy as jnp
from jax.experimental import pallas as pl
from jax.experimental.pallas import tpu as pltpu


_LANES = 512          # lane-dense output width (multiple of 128)
_TARGET_BLOCK_BYTES = 1 << 20   # ~1 MiB per block


def _swish_kernel(x_ref, o_ref):
    x = x_ref[...]
    # Compute the gate in f32 (EUP exp + VPU add/mul), store in the input dtype.
    xf = x.astype(jnp.float32)
    sig = 1.0 / (1.0 + jnp.exp(-xf))
    o_ref[...] = (xf * sig).astype(o_ref.dtype)


def swish(x):
    """Swish / SiLU: x * sigmoid(x). Works for any input shape/dtype."""
    orig_shape = x.shape
    dtype = x.dtype
    n = x.size
    elem_bytes = jnp.dtype(dtype).itemsize

    # Pick a row-tile that is a multiple of 8 sublanes and ~1 MiB.
    target_rows = max(8, (_TARGET_BLOCK_BYTES // (_LANES * elem_bytes)) // 8 * 8)
    rows_needed = pl.cdiv(n, _LANES)
    block_rows = min(target_rows, max(8, pl.cdiv(rows_needed, 8) * 8))
    rows = pl.cdiv(rows_needed, block_rows) * block_rows
    padded = rows * _LANES

    x_flat = jnp.pad(x.reshape(-1), (0, padded - n)).reshape(rows, _LANES)

    out_flat = pl.pallas_call(
        _swish_kernel,
        out_shape=jax.ShapeDtypeStruct((rows, _LANES), dtype),
        grid_spec=pltpu.PrefetchScalarGridSpec(
            num_scalar_prefetch=0,
            grid=(rows // block_rows,),
            in_specs=[pl.BlockSpec((block_rows, _LANES), lambda i: (i, 0))],
            out_specs=pl.BlockSpec((block_rows, _LANES), lambda i: (i, 0)),
        ),
        compiler_params=pltpu.CompilerParams(
            dimension_semantics=("parallel",)),
        input_output_aliases={0: 0},
    )(x_flat)

    return out_flat.reshape(-1)[:n].reshape(orig_shape)


def swish_reference(x):
    """Pure-JAX reference matching the PyTorch Swish forward."""
    xf = x.astype(jnp.float32)
    return (xf * (1.0 / (1.0 + jnp.exp(-xf)))).astype(x.dtype)


if __name__ == "__main__":
    B, C, H, W = 2, 4, 16, 16
    key = jax.random.PRNGKey(0)
    x = jax.random.normal(key, (B, C, H, W), dtype=jnp.float32)

    out = swish(x)
    jax.block_until_ready(out)

    ref = swish_reference(x)
    assert out.shape == (B, C, H, W)
    assert out.dtype == x.dtype
    assert jnp.allclose(out, ref, atol=1e-5, rtol=1e-5), "mismatch vs reference"

    print("KERNEL_OK")
</pallas_src>

<mosaic_0001>
module attributes {stable_mosaic.version = 11 : i64} {
  func.func @_swish_kernel(%arg0: i32, %arg1: memref<8x512xf32, #tpu.memory_space<vmem>>, %arg2: memref<8x512xf32, #tpu.memory_space<vmem>>) attributes {dimension_semantics = [#tpu.dimension_semantics<parallel>], iteration_bounds = array<i64: 1>, scalar_prefetch = 0 : i64, scratch_operands = 0 : i64, tpu.core_type = #tpu.core_type<tc>, window_params = [{transform_indices = @transform_0, window_bounds = array<i64: 8, 512>}, {transform_indices = @transform_1, window_bounds = array<i64: 8, 512>}]} {
    %c0 = arith.constant 0 : index
    %c0_0 = arith.constant 0 : index
    %0 = vector.load %arg1[%c0, %c0_0] : memref<8x512xf32, #tpu.memory_space<vmem>>, vector<8x512xf32>
    %cst = arith.constant 0.000000e+00 : f32
    %1 = vector.broadcast %cst : f32 to vector<8x512xf32>
    %2 = arith.subf %1, %0 : vector<8x512xf32>
    %3 = math.exp %2 : vector<8x512xf32>
    %cst_1 = arith.constant 1.000000e+00 : f32
    %4 = vector.broadcast %cst_1 : f32 to vector<8x512xf32>
    %5 = arith.addf %4, %3 : vector<8x512xf32>
    %cst_2 = arith.constant 1.000000e+00 : f32
    %6 = vector.broadcast %cst_2 : f32 to vector<8x512xf32>
    %7 = arith.divf %6, %5 : vector<8x512xf32>
    %8 = arith.mulf %0, %7 : vector<8x512xf32>
    %c0_3 = arith.constant 0 : index
    %c0_4 = arith.constant 0 : index
    %9 = vector.load %arg2[%c0_3, %c0_4] : memref<8x512xf32, #tpu.memory_space<vmem>>, vector<8x512xf32>
    tpu.vector_store %arg2[%c0_3, %c0_4], %8 {strides = array<i32>} : memref<8x512xf32, #tpu.memory_space<vmem>>, vector<8x512xf32>,
    return
  }
  func.func @transform_0(%arg0: i32) -> (i32, i32) {
    %c0_i32 = arith.constant 0 : i32
    %c0_i32_0 = arith.constant 0 : i32
    return %arg0, %c0_i32 : i32, i32
  }
  func.func @transform_1(%arg0: i32) -> (i32, i32) {
    %c0_i32 = arith.constant 0 : i32
    %c0_i32_0 = arith.constant 0 : i32
    return %arg0, %c0_i32 : i32, i32
  }
}

</mosaic_0001>

<bundles_post_ra>
// kernel: tpu_custom_call.1
= control target key start
LH: loop header
LB: loop body
LE: loop exit
PB: predicated region body
PF: predicated region fallthrough
CT: control target
= control target key end

     0   :  { %6 = vsyncpa [#allocation3], 0  ;;  %s174_s0 = inlined_call_operand.hbm [shape: f32[8,512], index: 0, kind: input, shape index: {}, may-alias: {0,1}]   ;;  %s175_s1 = inlined_call_operand.hbm [shape: f32[8,512], index: 1, kind: output, shape index: {}, may-alias: {0,1}]  }
   0x1   :  { %7 = vsyncpa [#allocation4], 0  ;;  %s138_s6 = smov [#allocation2]   ;;  %s90_s10 = scalar_lea.hbm %s174_s0, 512 }
   0x2   :  { %s14_s7 = sshll.u32 %s138_s6, 4  ;;  %p91_p0 = scmp.ne.s32.totalorder %s174_s0, %s90_s10  ;;  %s15_s7 = int_to_ptr.vmem [resolvable:$true] %s14_s7 }
   0x3   :  { %p94_p1 = scmp.lt.u32.totalorder %s90_s10, %s174_s0 }
   0x5   :  { %p96_p2 = pnand %p94_p1, %p91_p0 }
   0x7   :  { %99 = shalt.err (!%p96_p2)
}
   0x8   :  { %s100_s15 = scalar_lea.vmem %s15_s7, 512  ;;  %p105_p4 = scmp.lt.s32.totalorder %s15_s7, %s15_s7 }
   0x9   :  { %p101_p3 = scmp.ne.s32.totalorder %s15_s7, %s100_s15  ;;  %p106_p5 = scmp.lt.s32.totalorder %s100_s15, %s100_s15 }
   0xb   :  { %p107_p6 = por %p106_p5, %p105_p4 }
   0xd   :  { %p108_p7 = pnand %p107_p6, %p101_p3 }
   0xf   :  { %111 = shalt.err (!%p108_p7)
}
  0x10   :  { %17 = dma.hbm_to_vmem [thread:$0]  %s174_s0, 512, %s15_s7, [#allocation3]  }
  0x11   :  { %134 = dma.done.wait [#allocation3], 512  }
  0x12   :  { %135 = vsyncadd [#allocation3], 4294966784  ;;  %v21_v0 = vld [vmem:[#allocation2] sm:$0xff]  ;;  %v22_v1 = vld [vmem:[#allocation2 + $0x8] sm:$0xff]  ;;  %s139_s0 = smov [#allocation5]  }
  0x13   :  { %v23_v2 = vld [vmem:[#allocation2 + $0x10] sm:$0xff]  ;;  %v25_v3 = vsub.f32 0.0, %v21_v0  ;;  %v26_v4 = vsub.f32 0.0, %v22_v1  ;;  %v24_v6 = vld [vmem:[#allocation2 + $0x18] sm:$0xff]  ;;  %s63_s18 = sshll.u32 %s139_s0, 4  ;;  %s64_s18 = int_to_ptr.vmem [resolvable:$true] %s63_s18 }
  0x14   :  { %v27_v5 = vsub.f32 0.0, %v23_v2  ;;  %v28_v7 = vsub.f32 0.0, %v24_v6  ;;  %s112_s19 = scalar_lea.vmem %s64_s18, 512  ;;  %p117_p9 = scmp.lt.s32.totalorder %s64_s18, %s64_s18 }
  0x15   :  { %v29_v8 = vmul.f32 1.442695, %v25_v3  ;;  %v31_v9 = vmul.f32 1.442695, %v26_v4  ;;  %p113_p8 = scmp.ne.s32.totalorder %s64_s18, %s112_s19  ;;  %p118_p10 = scmp.lt.s32.totalorder %s112_s19, %s112_s19 }
  0x16   :  { %v33_v10 = vmul.f32 1.442695, %v27_v5  ;;  %v35_v11 = vmul.f32 1.442695, %v28_v7 }
  0x17   :  { %74 = vpow2.f32 %v29_v8  ;;  %p119_p11 = por %p118_p10, %p117_p9 }
  0x18   :  { %76 = vpow2.f32 %v31_v9 }
  0x19   :  { %78 = vpow2.f32 %v33_v10  ;;  %p120_p12 = pnand %p119_p11, %p113_p8 }
  0x1a   :  { %80 = vpow2.f32 %v35_v11 }
  0x21   :  { %v75_v12 = vpop.eup %74 }
  0x22   :  { %v77_v13 = vpop.eup %76  ;;  %v37_v14 = vadd.f32 1.0, %v75_v12 }
  0x23   :  { %v79_v15 = vpop.eup %78  ;;  %v38_v16 = vadd.f32 1.0, %v77_v13 }
  0x24   :  { %v81_v17 = vpop.eup %80  ;;  %82 = vrcp.f32 %v37_v14  ;;  %v39_v18 = vadd.f32 1.0, %v79_v15 }
  0x25   :  { %84 = vrcp.f32 %v38_v16  ;;  %v40_v19 = vadd.f32 1.0, %v81_v17 }
  0x26   :  { %86 = vrcp.f32 %v39_v18 }
  0x27   :  { %88 = vrcp.f32 %v40_v19 }
  0x2e   :  { %v83_v20 = vpop.eup %82 }
  0x2f   :  { %v85_v21 = vpop.eup %84  ;;  %v49_v22 = vmul.f32 %v83_v20, %v21_v0 }
  0x30   :  { %v87_v23 = vpop.eup %86  ;;  %v50_v24 = vmul.f32 %v85_v21, %v22_v1 }
  0x31   :  { %v89_v25 = vpop.eup %88  ;;  %53 = vst [vmem:[#allocation5] sm:$0xff] %v49_v22  ;;  %v51_v26 = vmul.f32 %v87_v23, %v23_v2 }
  0x32   :  { %54 = vst [vmem:[#allocation5 + $0x8] sm:$0xff] %v50_v24  ;;  %v52_v27 = vmul.f32 %v89_v25, %v24_v6 }
  0x33   :  { %55 = vst [vmem:[#allocation5 + $0x10] sm:$0xff] %v51_v26 }
  0x34   :  { %56 = vst [vmem:[#allocation5 + $0x18] sm:$0xff] %v52_v27 }
  0x35   :  { %123 = shalt.err (!%p120_p12)
}
  0x36   :  { %s124_s22 = scalar_lea.hbm %s175_s1, 512 }
  0x37   :  { %p125_p13 = scmp.ne.s32.totalorder %s175_s1, %s124_s22  ;;  %p128_p0 = scmp.lt.u32.totalorder %s124_s22, %s175_s1 }
  0x39   :  { %p130_p1 = pnand %p128_p0, %p125_p13 }
  0x3b   :  { %133 = shalt.err (!%p130_p1)
}
  0x3c   :  { %66 = dma.vmem_to_hbm [thread:$0]  %s64_s18, 512, %s175_s1, [#allocation4]  }
  0x3d   :  { %136 = dma.done.wait [#allocation4], 512  }
  0x3e   :  { %137 = vsyncadd [#allocation4], 4294966784 }
  0x3f   :  { %70 = vsyncpa [#allocation3], 1 }
  0x40   :  { %71 = vsyncpa [#allocation4], 1 }

</bundles_post_ra>
